<compile_context>
chip_gen: v7x
topology: tpu7x:2x2x1
jax: 0.10.0
libtpu: 0.0.40
codegen_flags: <defaults>
</compile_context>

<pallas_src>
import functools
import math

import jax
import jax.numpy as jnp
from jax.experimental import pallas as pl
from jax.experimental.pallas import tpu as pltpu


# --------------------------------------------------------------------------- #
# Shared in-kernel compute: Chebyshev recurrence + weight matmuls + bias.
# --------------------------------------------------------------------------- #
def _chebyshev_out(c, dn, w_ref, b_ref, K):
    """out = sum_k T_k(dn)*c @ W[k] + b, all in f32.

    The recurrence runs on VALUES (no packed VMEM scratch, no sub-128-lane slice
    stores).  The K weight matmuls are tiny next to the V matmuls, so per-k dots
    are fine and save M*K*Cin*4 bytes of scratch.
    """
    out = jnp.dot(c, w_ref[0], preferred_element_type=jnp.float32)
    if K > 1:
        d2 = 2.0 * dn                                   # hoisted constant
        tx_prev, tx_cur = c, dn * c
        out = out + jnp.dot(tx_cur, w_ref[1], preferred_element_type=jnp.float32)
        for k in range(2, K):
            tx_prev, tx_cur = tx_cur, d2 * tx_cur - tx_prev
            out = out + jnp.dot(tx_cur, w_ref[k],
                                preferred_element_type=jnp.float32)
    return out + b_ref[...]


# --------------------------------------------------------------------------- #
# Fused single-call path: V^T resident in VMEM, read from HBM exactly once.
# --------------------------------------------------------------------------- #
def _fused_kernel(vT_ref, ax_ref, dn_ref, w_ref, b_ref, yT_ref, *,
                  K, compute_dtype):
    vT = vT_ref[...]                                                  # (M, Np)
    c = jnp.dot(vT, ax_ref[...], preferred_element_type=jnp.float32)  # (M, Cin)
    out = _chebyshev_out(c, dn_ref[...], w_ref, b_ref, K)             # (M, Cout)
    # y^T = out^T @ V^T : contract M of the small `out` with M of vT; only the
    # small operand needs a transpose, the big vT stays in its natural layout,
    # and the (Cout, Np) result is lane-dense.
    yT_ref[...] = jax.lax.dot_general(
        out.astype(compute_dtype), vT, (((0,), (0,)), ((), ())),
        preferred_element_type=jnp.float32).astype(yT_ref.dtype)


# --------------------------------------------------------------------------- #
# Streaming two-pass path (V too large to keep resident).
# --------------------------------------------------------------------------- #
def _spectral_kernel(vT_ref, ax_ref, dn_ref, w_ref, b_ref, s_ref, c_acc, *, K):
    """Pass 1: accumulate c = V^T @ (A*x) over vertex blocks; finalize with the
    Chebyshev recurrence + weight matmuls + bias on the last block."""
    i = pl.program_id(0)

    @pl.when(i == 0)
    def _init():
        c_acc[...] = jnp.zeros_like(c_acc)

    c_acc[...] += jnp.dot(vT_ref[...], ax_ref[...],
                          preferred_element_type=jnp.float32)

    @pl.when(i == pl.num_programs(0) - 1)
    def _finalize():
        out = _chebyshev_out(c_acc[...], dn_ref[...], w_ref, b_ref, K)
        s_ref[...] = out.astype(s_ref.dtype)


def _project_kernel(sT_ref, vT_ref, yT_ref):
    """Pass 2: y^T block = spectral^T @ V^T block — plain [Cout,M]@[M,tile_n]
    matmul with lane-dense (Cout, tile_n) stores."""
    yT_ref[...] = jnp.dot(sT_ref[...], vT_ref[...],
                          preferred_element_type=jnp.float32).astype(yT_ref.dtype)


# --------------------------------------------------------------------------- #
# Sizing helpers (generation- and shape-aware).
# --------------------------------------------------------------------------- #
def _round_up(x, m):
    return ((x + m - 1) // m) * m


def _vmem_capacity_bytes():
    try:
        info = pltpu.get_tpu_info()
        cap = getattr(info, "vmem_capacity_bytes", None)
        if cap:
            return int(cap)
    except Exception:
        pass
    return 64 * 2**20          # conservative fallback (v7x per-core physical)


def _vmem_limit(needed, cap):
    # Enough for the working set (+ headroom), never above what any generation
    # can actually grant.
    return int(min(int(0.85 * cap), max(32 * 2**20, int(1.5 * needed))))


def _fused_estimate(n_pad, m, cin, cout, k, v_item):
    return (2 * m * n_pad * v_item              # V^T ref (+ possible materialized value)
            + n_pad * cin * v_item              # A*x
            + m * 4 + k * cin * cout * 4 + cout * 4
            + cout * n_pad * 4                  # y^T output
            + m * cin * 4 + 4 * m * cout * 4)   # c + recurrence temporaries


def _pick_tile_n(n, m, cin, cout, k, v_item, cap):
    """Largest multiple-of-128 vertex tile whose streaming working set fits."""
    budget = int(0.7 * cap)
    resident = (m * 4 + k * cin * cout * 4 + cout * 4   # Dn, W, bias
                + m * cin * 4                           # c accumulator
                + 2 * m * cout * (v_item + 4))          # spectral out + finalize temps
    tile = 128
    for cand in (4096, 2048, 1024, 512, 256, 128):
        stream = 2 * cand * (m + cin) * v_item + 2 * cout * cand * 4
        if resident + stream <= budget:
            tile = cand
            break
    return min(tile, max(128, _round_up(n, 128)))


# --------------------------------------------------------------------------- #
# Public entry point.
# --------------------------------------------------------------------------- #
def cheb_conv(x, V, D, A, weight, bias=None, *, compute_dtype=jnp.bfloat16,
              tile_n=None, fuse=None):
    N, Cin = x.shape
    M = V.shape[1]
    K, _, Cout = weight.shape

    if bias is None:
        bias = jnp.zeros((Cout,), dtype=jnp.float32)

    cap = _vmem_capacity_bytes()
    v_item = jnp.dtype(compute_dtype).itemsize

    # ---- wrapper-side prep (cheap XLA ops; keeps the kernels matmul-only) -----
    # Eigenvalue rescale precomputed so no kernel depends on D[-1] (safe for any
    # future M-blocked variant) and the recurrence constant stays hoisted.
    d_flat = D.reshape(-1).astype(jnp.float32)
    Dn = (2.0 * d_flat / d_flat[-1] - 1.0).reshape(M, 1)
    # Pre-multiplied, pre-cast input: removes the x and (N,1) A DMA streams.
    ax = (A.reshape(N, 1).astype(jnp.float32)
          * x.astype(jnp.float32)).astype(compute_dtype)          # (N, Cin)
    # Dominant operand V: carried once, transposed, in compute_dtype (bf16 by
    # default -> f32 MXU accumulation; opt out via compute_dtype=jnp.float32).
    VcT = V.T.astype(compute_dtype)                               # (M, N)
    w3 = weight.astype(jnp.float32)                               # (K, Cin, Cout)
    b2d = bias.reshape(1, Cout).astype(jnp.float32)

    def _pad_n(vT, axm, n_to):
        if n_to == N:
            return vT, axm
        return (jnp.pad(vT, ((0, 0), (0, n_to - N))),
                jnp.pad(axm, ((0, n_to - N), (0, 0))))

    n_pad_min = _round_up(N, 128)
    fused_est = _fused_estimate(n_pad_min, M, Cin, Cout, K, v_item)
    if fuse is None:
        use_fused = (fused_est <= int(0.6 * cap)) and tile_n is None
    else:
        use_fused = bool(fuse)

    # ---- fused single-call path -----------------------------------------------
    if use_fused:
        Np = n_pad_min
        vTp, axp = _pad_n(VcT, ax, Np)
        yT = pl.pallas_call(
            functools.partial(_fused_kernel, K=K, compute_dtype=compute_dtype),
            out_shape=jax.ShapeDtypeStruct((Cout, Np), jnp.float32),
            compiler_params=pltpu.CompilerParams(
                vmem_limit_bytes=_vmem_limit(fused_est, cap)),
            cost_estimate=pl.CostEstimate(
                flops=2 * Np * M * Cin + 2 * K * M * Cin * Cout + 2 * Np * M * Cout,
                transcendentals=0,
                bytes_accessed=(M * Np * v_item + Np * Cin * v_item + M * 4
                                + K * Cin * Cout * 4 + Cout * 4 + Cout * Np * 4)),
        )(vTp, axp, Dn, w3, b2d)
        return yT.T[:N, :]

    # ---- streaming two-pass path ----------------------------------------------
    if tile_n is None:
        tile_n = _pick_tile_n(N, M, Cin, Cout, K, v_item, cap)
    assert tile_n % 128 == 0, "tile_n must be a multiple of 128 (lane width)"
    Np = _round_up(N, tile_n)
    nb = Np // tile_n
    vTp, axp = _pad_n(VcT, ax, Np)   # zero-padded tail contributes nothing

    needed1 = (2 * tile_n * (M + Cin) * v_item            # V^T + A*x streams (x2 buf)
               + M * 4 + K * Cin * Cout * 4 + Cout * 4    # Dn, W, bias
               + M * Cin * 4                              # c accumulator
               + 2 * M * Cout * (v_item + 4))             # spectral out + temps
    spectral = pl.pallas_call(
        functools.partial(_spectral_kernel, K=K),
        out_shape=jax.ShapeDtypeStruct((M, Cout), compute_dtype),
        grid_spec=pltpu.PrefetchScalarGridSpec(
            num_scalar_prefetch=0,
            grid=(nb,),
            in_specs=[
                pl.BlockSpec((M, tile_n), lambda i: (0, i)),        # V^T block
                pl.BlockSpec((tile_n, Cin), lambda i: (i, 0)),      # (A*x) block
                pl.BlockSpec((M, 1), lambda i: (0, 0)),             # Dn (constant)
                pl.BlockSpec((K, Cin, Cout), lambda i: (0, 0, 0)),  # weight (constant)
                pl.BlockSpec((1, Cout), lambda i: (0, 0)),          # bias (constant)
            ],
            out_specs=pl.BlockSpec((M, Cout), lambda i: (0, 0)),    # spectral out
            scratch_shapes=[pltpu.VMEM((M, Cin), jnp.float32)],     # c accumulator
        ),
        compiler_params=pltpu.CompilerParams(
            dimension_semantics=("arbitrary",),                     # N is a reduction
            vmem_limit_bytes=_vmem_limit(needed1, cap)),
        cost_estimate=pl.CostEstimate(
            flops=2 * Np * M * Cin + 2 * K * M * Cin * Cout,
            transcendentals=0,
            bytes_accessed=(M * Np * v_item + Np * Cin * v_item + M * 4
                            + K * Cin * Cout * 4 + Cout * 4 + M * Cout * v_item)),
    )(vTp, axp, Dn, w3, b2d)

    # Tiny XLA transpose so pass 2 is a plain matmul with lane-dense output tiles.
    sT = spectral.T                                                 # (Cout, M)

    needed2 = (2 * tile_n * M * v_item + M * Cout * v_item
               + 2 * Cout * tile_n * 4)
    yT = pl.pallas_call(
        _project_kernel,
        out_shape=jax.ShapeDtypeStruct((Cout, Np), jnp.float32),
        grid_spec=pltpu.PrefetchScalarGridSpec(
            num_scalar_prefetch=0,
            grid=(nb,),
            in_specs=[
                pl.BlockSpec((Cout, M), lambda i: (0, 0)),          # spectral^T (constant)
                pl.BlockSpec((M, tile_n), lambda i: (0, i)),        # V^T block
            ],
            out_specs=pl.BlockSpec((Cout, tile_n), lambda i: (0, i)),
        ),
        compiler_params=pltpu.CompilerParams(
            dimension_semantics=("parallel",),                      # megacore split
            vmem_limit_bytes=_vmem_limit(needed2, cap)),
        cost_estimate=pl.CostEstimate(
            flops=2 * Np * M * Cout,
            transcendentals=0,
            bytes_accessed=M * Np * v_item + M * Cout * v_item + Cout * Np * 4),
    )(sT, vTp)

    return yT.T[:N, :]


# --------------------------------------------------------------------------- #
# Pure-JAX reference mirroring the PyTorch forward exactly.
# --------------------------------------------------------------------------- #
def cheb_conv_ref(x, V, D, A, weight, bias):
    K = weight.shape[0]
    Dn = 2.0 * D / D[-1] - 1.0
    c = V.T @ (A * x)
    tx0 = c
    out = tx0 @ weight[0]
    if K > 1:
        tx1 = Dn * c
        out = out + tx1 @ weight[1]
    for k in range(2, K):
        tx2 = 2.0 * Dn * tx1 - tx0
        out = out + tx2 @ weight[k]
        tx0, tx1 = tx1, tx2
    if bias is not None:
        out = out + bias
    return V @ out


if __name__ == "__main__":
    # Small, forward-consistent shapes (N chosen so the streaming grid is nb=2).
    N, M = 256, 64          # vertices, spectral basis size
    Cin, Cout, K = 8, 16, 6

    key = jax.random.PRNGKey(0)
    kx, kv, kd, ka, kw = jax.random.split(key, 5)

    x = jax.random.normal(kx, (N, Cin), dtype=jnp.float32)
    V = jax.random.normal(kv, (N, M), dtype=jnp.float32) / math.sqrt(N)
    # eigenvalues: positive, ascending, last one nonzero
    D = jnp.sort(jax.random.uniform(kd, (M, 1), minval=0.1, maxval=2.0),
                 axis=0).astype(jnp.float32)
    # per-vertex area weights: positive
    A = jax.random.uniform(ka, (N, 1), minval=0.5, maxval=1.5).astype(jnp.float32)

    # xavier_uniform-style init for a (K, Cin, Cout) tensor, bias = 0.
    fan_in, fan_out = Cin * Cout, K * Cout
    bound = math.sqrt(6.0 / (fan_in + fan_out))
    weight = jax.random.uniform(
        kw, (K, Cin, Cout), minval=-bound, maxval=bound).astype(jnp.float32)
    bias = jnp.zeros((Cout,), dtype=jnp.float32)

    ref = cheb_conv_ref(x, V, D, A, weight, bias)

    # Fused single-kernel path (V resident in VMEM), bf16 fast path + f32 check.
    out_fused = jax.block_until_ready(cheb_conv(x, V, D, A, weight, bias))
    assert out_fused.shape == (N, Cout)
    assert jnp.allclose(out_fused, ref, atol=5e-2, rtol=5e-2), "fused bf16 mismatch"

    out_fused32 = jax.block_until_ready(
        cheb_conv(x, V, D, A, weight, bias, compute_dtype=jnp.float32))
    assert jnp.allclose(out_fused32, ref, atol=2e-4, rtol=2e-4), "fused f32 mismatch"

    # Streaming two-pass path (forced) — exercises the N grid, the c accumulator
    # init/finalize and the lane-dense (Cout, tile_n) output stores.
    out_2p = jax.block_until_ready(
        cheb_conv(x, V, D, A, weight, bias, fuse=False, tile_n=128))
    assert jnp.allclose(out_2p, ref, atol=5e-2, rtol=5e-2), "two-pass bf16 mismatch"

    out_2p32 = jax.block_until_ready(
        cheb_conv(x, V, D, A, weight, bias, fuse=False, tile_n=128,
                  compute_dtype=jnp.float32))
    assert jnp.allclose(out_2p32, ref, atol=2e-4, rtol=2e-4), "two-pass f32 mismatch"

    print("KERNEL_OK")
</pallas_src>

<mosaic_0001>
module attributes {stable_mosaic.version = 11 : i64} {
  func.func @_fused_kernel(%arg0: memref<64x256xbf16, #tpu.memory_space<vmem>>, %arg1: memref<256x8xbf16, #tpu.memory_space<vmem>>, %arg2: memref<64x1xf32, #tpu.memory_space<vmem>>, %arg3: memref<6x8x16xf32, #tpu.memory_space<vmem>>, %arg4: memref<1x16xf32, #tpu.memory_space<vmem>>, %arg5: memref<16x256xf32, #tpu.memory_space<vmem>>) attributes {dimension_semantics = [], scalar_prefetch = 0 : i64, scratch_operands = 0 : i64, tpu.core_type = #tpu.core_type<tc>} {
    %c0 = arith.constant 0 : index
    %c0_0 = arith.constant 0 : index
    %0 = vector.load %arg0[%c0, %c0_0] : memref<64x256xbf16, #tpu.memory_space<vmem>>, vector<64x256xbf16>
    %c0_1 = arith.constant 0 : index
    %c0_2 = arith.constant 0 : index
    %1 = vector.load %arg1[%c0_1, %c0_2] : memref<256x8xbf16, #tpu.memory_space<vmem>>, vector<256x8xbf16>
    %cst = arith.constant dense<0.000000e+00> : vector<64x8xf32>
    %2 = tpu.matmul %0, %1, %cst {dimension_numbers = #tpu.dot_dimension_numbers<[1], [0], [0], [1], [0, 0, 1, 1], [], []>} : vector<64x256xbf16>, vector<256x8xbf16>, vector<64x8xf32> -> vector<64x8xf32>
    %c0_3 = arith.constant 0 : index
    %c0_4 = arith.constant 0 : index
    %3 = vector.load %arg2[%c0_3, %c0_4] : memref<64x1xf32, #tpu.memory_space<vmem>>, vector<64x1xf32>
    %c0_5 = arith.constant 0 : index
    %c0_6 = arith.constant 0 : index
    %c0_7 = arith.constant 0 : index
    %4 = vector.load %arg3[%c0_5, %c0_6, %c0_7] : memref<6x8x16xf32, #tpu.memory_space<vmem>>, vector<1x8x16xf32>
    %5 = vector.shape_cast %4 : vector<1x8x16xf32> to vector<8x16xf32>
    %cst_8 = arith.constant dense<0.000000e+00> : vector<64x16xf32>
    %6 = tpu.matmul %2, %5, %cst_8 {dimension_numbers = #tpu.dot_dimension_numbers<[1], [0], [0], [1], [0, 0, 1, 1], [], []>} : vector<64x8xf32>, vector<8x16xf32>, vector<64x16xf32> -> vector<64x16xf32>
    %cst_9 = arith.constant 2.000000e+00 : f32
    %7 = vector.broadcast %cst_9 : f32 to vector<64x1xf32>
    %8 = arith.mulf %7, %3 : vector<64x1xf32>
    %9 = vector.broadcast %3 : vector<64x1xf32> to vector<64x8xf32>
    %10 = arith.mulf %9, %2 : vector<64x8xf32>
    %c1 = arith.constant 1 : index
    %c0_10 = arith.constant 0 : index
    %c0_11 = arith.constant 0 : index
    %11 = vector.load %arg3[%c1, %c0_10, %c0_11] : memref<6x8x16xf32, #tpu.memory_space<vmem>>, vector<1x8x16xf32>
    %12 = vector.shape_cast %11 : vector<1x8x16xf32> to vector<8x16xf32>
    %cst_12 = arith.constant dense<0.000000e+00> : vector<64x16xf32>
    %13 = tpu.matmul %10, %12, %cst_12 {dimension_numbers = #tpu.dot_dimension_numbers<[1], [0], [0], [1], [0, 0, 1, 1], [], []>} : vector<64x8xf32>, vector<8x16xf32>, vector<64x16xf32> -> vector<64x16xf32>
    %14 = arith.addf %6, %13 : vector<64x16xf32>
    %15 = vector.broadcast %8 : vector<64x1xf32> to vector<64x8xf32>
    %16 = arith.mulf %15, %10 : vector<64x8xf32>
    %17 = arith.subf %16, %2 : vector<64x8xf32>
    %c2 = arith.constant 2 : index
    %c0_13 = arith.constant 0 : index
    %c0_14 = arith.constant 0 : index
    %18 = vector.load %arg3[%c2, %c0_13, %c0_14] : memref<6x8x16xf32, #tpu.memory_space<vmem>>, vector<1x8x16xf32>
    %19 = vector.shape_cast %18 : vector<1x8x16xf32> to vector<8x16xf32>
    %cst_15 = arith.constant dense<0.000000e+00> : vector<64x16xf32>
    %20 = tpu.matmul %17, %19, %cst_15 {dimension_numbers = #tpu.dot_dimension_numbers<[1], [0], [0], [1], [0, 0, 1, 1], [], []>} : vector<64x8xf32>, vector<8x16xf32>, vector<64x16xf32> -> vector<64x16xf32>
    %21 = arith.addf %14, %20 : vector<64x16xf32>
    %22 = vector.broadcast %8 : vector<64x1xf32> to vector<64x8xf32>
    %23 = arith.mulf %22, %17 : vector<64x8xf32>
    %24 = arith.subf %23, %10 : vector<64x8xf32>
    %c3 = arith.constant 3 : index
    %c0_16 = arith.constant 0 : index
    %c0_17 = arith.constant 0 : index
    %25 = vector.load %arg3[%c3, %c0_16, %c0_17] : memref<6x8x16xf32, #tpu.memory_space<vmem>>, vector<1x8x16xf32>
    %26 = vector.shape_cast %25 : vector<1x8x16xf32> to vector<8x16xf32>
    %cst_18 = arith.constant dense<0.000000e+00> : vector<64x16xf32>
    %27 = tpu.matmul %24, %26, %cst_18 {dimension_numbers = #tpu.dot_dimension_numbers<[1], [0], [0], [1], [0, 0, 1, 1], [], []>} : vector<64x8xf32>, vector<8x16xf32>, vector<64x16xf32> -> vector<64x16xf32>
    %28 = arith.addf %21, %27 : vector<64x16xf32>
    %29 = vector.broadcast %8 : vector<64x1xf32> to vector<64x8xf32>
    %30 = arith.mulf %29, %24 : vector<64x8xf32>
    %31 = arith.subf %30, %17 : vector<64x8xf32>
    %c4 = arith.constant 4 : index
    %c0_19 = arith.constant 0 : index
    %c0_20 = arith.constant 0 : index
    %32 = vector.load %arg3[%c4, %c0_19, %c0_20] : memref<6x8x16xf32, #tpu.memory_space<vmem>>, vector<1x8x16xf32>
    %33 = vector.shape_cast %32 : vector<1x8x16xf32> to vector<8x16xf32>
    %cst_21 = arith.constant dense<0.000000e+00> : vector<64x16xf32>
    %34 = tpu.matmul %31, %33, %cst_21 {dimension_numbers = #tpu.dot_dimension_numbers<[1], [0], [0], [1], [0, 0, 1, 1], [], []>} : vector<64x8xf32>, vector<8x16xf32>, vector<64x16xf32> -> vector<64x16xf32>
    %35 = arith.addf %28, %34 : vector<64x16xf32>
    %36 = vector.broadcast %8 : vector<64x1xf32> to vector<64x8xf32>
    %37 = arith.mulf %36, %31 : vector<64x8xf32>
    %38 = arith.subf %37, %24 : vector<64x8xf32>
    %c5 = arith.constant 5 : index
    %c0_22 = arith.constant 0 : index
    %c0_23 = arith.constant 0 : index
    %39 = vector.load %arg3[%c5, %c0_22, %c0_23] : memref<6x8x16xf32, #tpu.memory_space<vmem>>, vector<1x8x16xf32>
    %40 = vector.shape_cast %39 : vector<1x8x16xf32> to vector<8x16xf32>
    %cst_24 = arith.constant dense<0.000000e+00> : vector<64x16xf32>
    %41 = tpu.matmul %38, %40, %cst_24 {dimension_numbers = #tpu.dot_dimension_numbers<[1], [0], [0], [1], [0, 0, 1, 1], [], []>} : vector<64x8xf32>, vector<8x16xf32>, vector<64x16xf32> -> vector<64x16xf32>
    %42 = arith.addf %35, %41 : vector<64x16xf32>
    %c0_25 = arith.constant 0 : index
    %c0_26 = arith.constant 0 : index
    %43 = vector.load %arg4[%c0_25, %c0_26] : memref<1x16xf32, #tpu.memory_space<vmem>>, vector<1x16xf32>
    %44 = vector.broadcast %43 : vector<1x16xf32> to vector<64x16xf32>
    %45 = arith.addf %42, %44 : vector<64x16xf32>
    %46 = arith.truncf %45 : vector<64x16xf32> to vector<64x16xbf16>
    %cst_27 = arith.constant dense<0.000000e+00> : vector<16x256xf32>
    %47 = tpu.matmul %46, %0, %cst_27 {dimension_numbers = #tpu.dot_dimension_numbers<[0], [0], [1], [1], [0, 1, 1, 1], [], []>} : vector<64x16xbf16>, vector<64x256xbf16>, vector<16x256xf32> -> vector<16x256xf32>
    %c0_28 = arith.constant 0 : index
    %c0_29 = arith.constant 0 : index
    %48 = vector.load %arg5[%c0_28, %c0_29] : memref<16x256xf32, #tpu.memory_space<vmem>>, vector<16x256xf32>
    tpu.vector_store %arg5[%c0_28, %c0_29], %47 {strides = array<i32>} : memref<16x256xf32, #tpu.memory_space<vmem>>, vector<16x256xf32>,
    return
  }
}

</mosaic_0001>

<bundles_post_ra>
// kernel: tpu_custom_call.1
= control target key start
LH: loop header
LB: loop body
LE: loop exit
PB: predicated region body
PF: predicated region fallthrough
CT: control target
= control target key end

     0   :  { %v1706_v2 = vmov 0   ;;  %s2048_s0 = inlined_call_operand.vmem [shape: bf16[64,256], index: 0, kind: input, shape index: {}]   ;;  %s2049_s1 = inlined_call_operand.vmem [shape: bf16[256,8], index: 1, kind: input, shape index: {}]   ;;  %s2050_s2 = inlined_call_operand.vmem [shape: f32[64,1], index: 2, kind: input, shape index: {}]   ;;  %s2051_s3 = inlined_call_operand.vmem [shape: f32[6,8,16], index: 3, kind: input, shape index: {}]   ;;  %s2052_s4 = inlined_call_operand.vmem [shape: f32[1,16], index: 4, kind: input, shape index: {}]   ;;  %s2053_s5 = inlined_call_operand.hbm [shape: f32[16,256], index: 5, kind: output, shape index: {}]  }
   0x1   :  { %v1654_v0 = vld [vmem:[%s2049_s1 + $0x40] sm:$0xff]   ;;  %1652 = vset.pattern.permute.xlu0 %v1706_v2  ;;  %1653 = vset.pattern.permute.xlu1 %v1706_v2  ;;  %v1656_v3 = vld [vmem:[%s2049_s1 + $0x48] sm:$0xff]   ;;  %v1658_v5 = vld [vmem:[%s2049_s1 + $0x50] sm:$0xff]  }
   0x2   :  { %v1655_v1 = vld [vmem:[%s2049_s1] sm:$0xff]   ;;  %1430 = vmatprep.subr.bf16.mxu0 %v1654_v0  ;;  %v1657_v4 = vld [vmem:[%s2049_s1 + $0x8] sm:$0xff]   ;;  %v1659_v6 = vld [vmem:[%s2049_s1 + $0x10] sm:$0xff]  }
   0x3   :  { %1431 = vmatpush3.bf16.msra.mxu0 %v1655_v1  ;;  %v1660_v7 = vld [vmem:[%s2049_s1 + $0x58] sm:$0xff]   ;;  %v1662_v9 = vld [vmem:[%s2049_s1 + $0x60] sm:$0xff]   ;;  %v1664_v11 = vld [vmem:[%s2049_s1 + $0x68] sm:$0xff]  }
   0x4   :  { %1432 = vmatprep.subr.bf16.mxu0 %v1656_v3  ;;  %v1661_v8 = vld [vmem:[%s2049_s1 + $0x18] sm:$0xff]   ;;  %v1663_v10 = vld [vmem:[%s2049_s1 + $0x20] sm:$0xff]   ;;  %v1665_v13 = vld [vmem:[%s2049_s1 + $0x28] sm:$0xff]  }
   0x5   :  { %v1778_v12 = vld [vmem:[%s2048_s0 + $0x4] ss:$8 sps:$4 sm:$0xff]   ;;  %v1666_v14 = vld [vmem:[%s2049_s1 + $0x70] sm:$0xff]   ;;  %v1668_v19 = vld [vmem:[%s2049_s1 + $0x78] sm:$0xff]  }
   0x6   :  { %230 = vmatprep.mubr.bf16.mxu0 %v1778_v12  ;;  %v263_v15 = vld [vmem:[%s2050_s2] sm:$0xff]  ;;  %v264_v16 = vld [vmem:[%s2050_s2 + $0x8] sm:$0xff]  ;;  %v1667_v18 = vld [vmem:[%s2049_s1 + $0x30] sm:$0xff]  }
   0x7   :  { %1433 = vmatpush3.bf16.msra.mxu0 %v1657_v4  ;;  %282 = vperm.xlu0 %1652, %v263_v15   ;;  %v272_v17 = vmul.f32 2.0, %v263_v15  ;;  %v273_v20 = vmul.f32 2.0, %v264_v16 }
   0x8   :  { %1434 = vmatprep.subr.bf16.mxu0 %v1658_v5 }
   0x9   :  { %591 = vperm.xlu1 %1653, %v272_v17  }
   0xb   :  { %1435 = vmatpush3.bf16.msra.mxu0 %v1659_v6 }
   0xc   :  { %1436 = vmatprep.subr.bf16.mxu0 %v1660_v7 }
   0xf   :  { %1437 = vmatpush3.bf16.msra.mxu0 %v1661_v8 }
  0x10   :  { %1438 = vmatprep.subr.bf16.mxu0 %v1662_v9 }
  0x13   :  { %1439 = vmatpush3.bf16.msra.mxu0 %v1663_v10 }
  0x14   :  { %1440 = vmatprep.subr.bf16.mxu0 %v1664_v11 }
  0x17   :  { %1441 = vmatpush3.bf16.msra.mxu0 %v1665_v13 }
  0x18   :  { %1442 = vmatprep.subr.bf16.mxu0 %v1666_v14 }
  0x19   :  { %10 = vsyncpa [#allocation3], 0  ;;  %287 = vperm.xlu0 %1652, %v264_v16   ;;  %v1669_v21 = vld [vmem:[%s2049_s1 + $0x38] sm:$0xff]   ;;  %v265_v22 = vld [vmem:[%s2050_s2 + $0x10] sm:$0xff]  ;;  %596 = vperm.xlu1 %1653, %v273_v20   ;;  %vm330_vm0 = vcmask 64512   ;;  %vm1284_vm1 = vcmask 523264  }
  0x1a   :  { %v266_v23 = vld [vmem:[%s2050_s2 + $0x18] sm:$0xff]  ;;  %v1811_v24 = vld [vmem:[%s2048_s0] ss:$8 sps:$4 sm:$0xff]   ;;  %v274_v25 = vmul.f32 2.0, %v265_v22  ;;  %v1834_v32 = vld [vmem:[%s2048_s0 + $0x24] ss:$8 sps:$4 sm:$0xff]  }
  0x1b   :  { %1443 = vmatpush3.bf16.msra.mxu0 %v1667_v18  ;;  %v1816_v26 = vld [vmem:[%s2048_s0 + $0x14] ss:$8 sps:$4 sm:$0xff]   ;;  %v275_v27 = vmul.f32 2.0, %v266_v23  ;;  %v267_v28 = vld [vmem:[%s2050_s2 + $0x20] sm:$0xff]  ;;  %v268_v29 = vld [vmem:[%s2050_s2 + $0x28] sm:$0xff] }
  0x1c   :  { %1444 = vmatprep.subr.bf16.mxu0 %v1668_v19  ;;  %v1829_v30 = vld [vmem:[%s2048_s0 + $0x10] ss:$8 sps:$4 sm:$0xff]   ;;  %v276_v31 = vmul.f32 2.0, %v267_v28  ;;  %v277_v33 = vmul.f32 2.0, %v268_v29  ;;  %v1847_v36 = vld [vmem:[%s2048_s0 + $0x20] ss:$8 sps:$4 sm:$0xff]  }
  0x1d   :  { %292 = vperm.xlu0 %1652, %v265_v22   ;;  %297 = vperm.xlu1 %1653, %v266_v23   ;;  %v269_v34 = vld [vmem:[%s2050_s2 + $0x30] sm:$0xff]  ;;  %v270_v35 = vld [vmem:[%s2050_s2 + $0x38] sm:$0xff]  ;;  %v271_v41 = vld [vmem:[%s2051_s3] sm:$0xff] }
  0x1e   :  { %v278_v37 = vmul.f32 2.0, %v269_v34  ;;  %v1852_v38 = vld [vmem:[%s2048_s0 + $0x34] ss:$8 sps:$4 sm:$0xff]   ;;  %v279_v39 = vmul.f32 2.0, %v270_v35  ;;  %v1859_v40 = vld [vmem:[%s2048_s0 + $0x30] ss:$8 sps:$4 sm:$0xff]   ;;  %1538 = vmatprep.subr.mxu1 %v271_v41 }
  0x1f   :  { %1445 = vmatpush3.bf16.msra.mxu0 %v1669_v21  ;;  %1539 = vmatpush3.msra.mxu1 %v271_v41  ;;  %v1375_v42 = vld [vmem:[%s2051_s3 + $0x8] sm:$0xff]  ;;  %v1392_v43 = vld [vmem:[%s2051_s3 + $0x10] sm:$0xff]  ;;  %v1888_v57 = vld [vmem:[%s2051_s3 + $0x18] sm:$0xff] }
  0x20   :  { %1524 = vmatprep.subr.mxu0 %v1375_v42  ;;  %1552 = vmatprep.subr.mxu1 %v1392_v43 }
  0x21   :  { %601 = vperm.xlu0 %1652, %v274_v25   ;;  %606 = vperm.xlu1 %1653, %v275_v27  }
  0x22   :  { %231 = vmatmul.mubr.bf16.vlgmr.msra.gmra.mrb[0].mxu0 %v1811_v24 }
  0x23   :  { %238 = vmatprep.mubr.bf16.mxu0 %v1816_v26  ;;  %1525 = vmatpush3.msra.mxu0 %v1375_v42 }
  0x24   :  { %1288 = vmatprep.subr.bf16.mxu0 %v1778_v12 }
  0x25   :  { %302 = vperm.xlu0 %1652, %v267_v28   ;;  %307 = vperm.xlu1 %1653, %v268_v29  }
  0x29   :  { %611 = vperm.xlu0 %1652, %v276_v31   ;;  %616 = vperm.xlu1 %1653, %v277_v33  }
  0x2a   :  { %239 = vmatmul.mubr.bf16.gmra.mrb[4].mxu0 %v1829_v30 }
  0x2b   :  { %246 = vmatprep.mubr.bf16.mxu0 %v1834_v32 }
  0x2d   :  { %312 = vperm.xlu0 %1652, %v269_v34   ;;  %317 = vperm.xlu1 %1653, %v270_v35  }
  0x31   :  { %621 = vperm.xlu0 %1652, %v278_v37   ;;  %626 = vperm.xlu1 %1653, %v279_v39  }
  0x32   :  { %247 = vmatmul.mubr.bf16.gmra.mrb[8].mxu0 %v1847_v36 }
  0x33   :  { %254 = vmatprep.mubr.bf16.mxu0 %v1852_v38 }
  0x3a   :  { %255 = vmatmul.mubr.bf16.gmra.mrb[12].mxu0 %v1859_v40 }
  0x86   :  { %v283_v44 = vpop.permute.xlu0 %282 }
  0x88   :  { %v1872_v45 = vpop.permute.xlu1 %591 }
  0x98   :  { %v288_v46 = vpop.permute.xlu0 %287  ;;  %v1874_v47 = vpop.permute.xlu1 %596 }
  0x9c   :  { %v293_v52 = vpop.permute.xlu0 %292  ;;  %v298_v56 = vpop.permute.xlu1 %297 }
  0xa0   :  { %v1900_v60 = vpop.permute.xlu0 %601  ;;  %v607_v0 = vpop.permute.xlu1 %606 }
  0xa4   :  { %v303_v6 = vpop.permute.xlu0 %302  ;;  %v308_v9 = vpop.permute.xlu1 %307 }
  0xa8   :  { %v1918_v17 = vpop.permute.xlu0 %611  ;;  %v1926_v20 = vpop.permute.xlu1 %616 }
  0xac   :  { %v313_v28 = vpop.permute.xlu0 %312  ;;  %v318_v35 = vpop.permute.xlu1 %317 }
  0xf5   :  { %v1446_v48 = vpop.f32.mrb[0].mxu0 }
  0xf6   :  { %v1447_v49 = vpop.f32.mrb[1].mxu0 }
  0xf7   :  { %v1876_v50 = vadd.f32 %v1447_v49, %v1446_v48  ;;  %v1449_v51 = vpop.f32.mrb[2].mxu0 }
  0xf8   :  { %v1450_v53 = vpop.f32.mrb[3].mxu0 }
  0xf9   :  { %v1879_v54 = vmul.f32 %v1876_v50, %v283_v44  ;;  %v1881_v55 = vadd.f32 %v1450_v53, %v1449_v51  ;;  %1540 = vmatprep.mubr.msk.f32.mxu1 %vm330_vm0, %v1876_v50  ;;  %v1962_v44 = vpop.permute.xlu0 %621 }
  0xfb   :  { %v1891_v58 = vmul.f32 %v1881_v55, %v288_v46  ;;  %1526 = vmatprep.mubr.msk.f32.mxu0 %vm330_vm0, %v1879_v54  ;;  %1541 = vmatmul.mubr.msk.f32.vlgmr.msra.gmra.mrb[0].mxu1 %vm330_vm0, %v1881_v55  ;;  %v629_v23 = vmul.f32 %v1872_v45, %v1879_v54 }
  0xfc   :  { %1553 = vmatpush3.msra.mxu1 %v1392_v43  ;;  %v1410_v43 = vld [vmem:[%s2051_s3 + $0x20] sm:$0xff] }
  0xfd   :  { %v1452_v59 = vpop.f32.mrb[4].mxu0  ;;  %1527 = vmatmul.mubr.msk.f32.vlgmr.msra.gmra.mrb[16].mxu0 %vm330_vm0, %v1891_v58  ;;  %1566 = vmatprep.subr.mxu1 %v1888_v57  ;;  %v630_v31 = vmul.f32 %v1874_v47, %v1891_v58  ;;  %v637_v34 = vsub.f32 %v629_v23, %v1876_v50  ;;  %v1968_v50 = vpop.permute.xlu1 %626 }
  0xfe   :  { %v1453_v61 = vpop.f32.mrb[5].mxu0  ;;  %1289 = vmatpush1.bf16.msra.mxu0 %v1811_v24 }
  0xff   :  { %v1454_v62 = vadd.f32 %v1453_v61, %v1452_v59  ;;  %v1455_v63 = vpop.f32.mrb[6].mxu0  ;;  %1290 = vmatprep.subr.bf16.mxu0 %v1816_v26  ;;  %v784_v53 = vmul.f32 %v637_v34, %v1872_v45 }
 0x100   :  { %v1456_v1 = vpop.f32.mrb[7].mxu0 }
 0x101   :  { %v1904_v3 = vmul.f32 %v1454_v62, %v293_v52  ;;  %v1457_v4 = vadd.f32 %v1456_v1, %v1455_v63  ;;  %1543 = vmatprep.mubr.msk.f32.mxu1 %vm330_vm0, %v1454_v62 }
 0x102   :  { %1291 = vmatpush1.bf16.msra.mxu0 %v1829_v30 }
 0x103   :  { %v323_v5 = vmul.f32 %v1457_v4, %v298_v56  ;;  %1529 = vmatprep.mubr.msk.f32.mxu0 %vm330_vm0, %v1904_v3  ;;  %1544 = vmatmul.mubr.msk.f32.gmra.mrb[2].mxu1 %vm330_vm0, %v1457_v4 }
 0x104   :  { %1292 = vmatprep.subr.bf16.mxu0 %v1834_v32 }
 0x105   :  { %v632_v7 = vmul.f32 %v607_v0, %v323_v5  ;;  %v1458_v8 = vpop.f32.mrb[8].mxu0  ;;  %1530 = vmatmul.mubr.msk.f32.gmra.mrb[18].mxu0 %vm330_vm0, %v323_v5 }
 0x106   :  { %v1459_v10 = vpop.f32.mrb[9].mxu0  ;;  %1293 = vmatpush1.bf16.msra.mxu0 %v1847_v36  ;;  %v631_v36 = vmul.f32 %v1900_v60, %v1904_v3 }
 0x107   :  { %v640_v11 = vsub.f32 %v632_v7, %v1457_v4  ;;  %v1460_v12 = vadd.f32 %v1459_v10, %v1458_v8  ;;  %v1461_v13 = vpop.f32.mrb[10].mxu0  ;;  %1294 = vmatprep.subr.bf16.mxu0 %v1852_v38 }
 0x108   :  { %v1462_v14 = vpop.f32.mrb[11].mxu0  ;;  %v639_v41 = vsub.f32 %v631_v36, %v1454_v62 }
 0x109   :  { %v1915_v15 = vmul.f32 %v1460_v12, %v303_v6  ;;  %v1463_v16 = vadd.f32 %v1462_v14, %v1461_v13  ;;  %1546 = vmatprep.mubr.msk.f32.mxu1 %vm330_vm0, %v1460_v12  ;;  %v787_v18 = vmul.f32 %v640_v11, %v607_v0 }
 0x10a   :  { %1295 = vmatpush1.bf16.msra.mxu0 %v1859_v40  ;;  %v638_v40 = vsub.f32 %v630_v31, %v1881_v55  ;;  %v786_v59 = vmul.f32 %v639_v41, %v1900_v60 }
 0x10b   :  { %v1921_v19 = vmul.f32 %v1463_v16, %v308_v9  ;;  %1532 = vmatprep.mubr.msk.f32.mxu0 %vm330_vm0, %v1915_v15  ;;  %1547 = vmatmul.mubr.msk.f32.gmra.mrb[4].mxu1 %vm330_vm0, %v1463_v16  ;;  %v1928_v21 = vsub.f32 %v787_v18, %v323_v5  ;;  %v633_v42 = vmul.f32 %v1918_v17, %v1915_v15 }
 0x10c   :  { %v785_v55 = vmul.f32 %v638_v40, %v1874_v47  ;;  %v794_v62 = vsub.f32 %v786_v59, %v1904_v3 }
 0x10d   :  { %v1464_v22 = vpop.f32.mrb[12].mxu0  ;;  %1533 = vmatmul.mubr.msk.f32.gmra.mrb[20].mxu0 %vm330_vm0, %v1921_v19  ;;  %v942_v25 = vmul.f32 %v1928_v21, %v607_v0  ;;  %v634_v46 = vmul.f32 %v1926_v20, %v1921_v19  ;;  %v641_v48 = vsub.f32 %v633_v42, %v1460_v12 }
 0x10e   :  { %v1465_v24 = vpop.f32.mrb[13].mxu0  ;;  %v793_v61 = vsub.f32 %v785_v55, %v1891_v58  ;;  %v941_v10 = vmul.f32 %v794_v62, %v1900_v60 }
 0x10f   :  { %v1466_v26 = vadd.f32 %v1465_v24, %v1464_v22  ;;  %v1467_v27 = vpop.f32.mrb[14].mxu0  ;;  %v1935_v30 = vsub.f32 %v942_v25, %v640_v11  ;;  %v788_v63 = vmul.f32 %v641_v48, %v1918_v17 }
 0x110   :  { %v1468_v29 = vpop.f32.mrb[15].mxu0  ;;  %v940_v7 = vmul.f32 %v793_v61, %v1874_v47  ;;  %v949_v12 = vsub.f32 %v941_v10, %v639_v41 }
 0x111   :  { %v326_v32 = vmul.f32 %v1466_v26, %v313_v28  ;;  %v1469_v33 = vadd.f32 %v1468_v29, %v1467_v27  ;;  %1549 = vmatprep.mubr.msk.f32.mxu1 %vm330_vm0, %v1466_v26  ;;  %v1944_v37 = vmul.f32 %v1935_v30, %v607_v0  ;;  %v1419_v0 = vld [vmem:[%s2051_s3 + $0x28] sm:$0xff]  ;;  %v796_v1 = vsub.f32 %v788_v63, %v1915_v15 }
 0x112   :  { %v1096_v27 = vmul.f32 %v949_v12, %v1900_v60 }
 0x113   :  { %v327_v38 = vmul.f32 %v1469_v33, %v318_v35  ;;  %1535 = vmatprep.mubr.msk.f32.mxu0 %vm330_vm0, %v326_v32  ;;  %1550 = vmatmul.mubr.msk.f32.gmra.mrb[6].mxu1 %vm330_vm0, %v1469_v33  ;;  %v1105_v39 = vsub.f32 %v1944_v37, %v1928_v21  ;;  %v635_v49 = vmul.f32 %v1962_v44, %v326_v32 }
 0x114   :  { %1554 = vmatprep.mubr.msk.f32.mxu1 %vm330_vm0, %v637_v34  ;;  %v943_v13 = vmul.f32 %v796_v1, %v1918_v17  ;;  %v1104_v29 = vsub.f32 %v1096_v27, %v794_v62 }
 0x115   :  { %1536 = vmatmul.mubr.msk.f32.gmra.mrb[22].mxu0 %vm330_vm0, %v327_v38  ;;  %v636_v51 = vmul.f32 %v1968_v50, %v327_v38  ;;  %v643_v52 = vsub.f32 %v635_v49, %v1466_v26 }
 0x116   :  { %1320 = vmatprep.mubr.bf16.mxu0 %v1706_v2  ;;  %v642_v2 = vsub.f32 %v634_v46, %v1463_v16  ;;  %v951_v15 = vsub.f32 %v943_v13, %v641_v48 }
 0x117   :  { %1555 = vmatmul.mubr.msk.f32.vlgmr.msra.gmra.mrb[0].mxu1 %vm330_vm0, %v638_v40  ;;  %v644_v56 = vsub.f32 %v636_v51, %v1469_v33  ;;  %v790_v58 = vmul.f32 %v643_v52, %v1962_v44 }
 0x118   :  { %1567 = vmatpush3.msra.mxu1 %v1888_v57  ;;  %1557 = vmatprep.mubr.msk.f32.mxu1 %vm330_vm0, %v639_v41  ;;  %v792_v57 = vsub.f32 %v784_v53, %v1879_v54  ;;  %v789_v54 = vmul.f32 %v642_v2, %v1926_v20  ;;  %v1428_v41 = vld [vmem:[%s2052_s4] ss:$0 sm:$0xff]  ;;  %s1707_s4 = smov [#allocation2]  }
 0x119   :  { %1580 = vmatprep.subr.mxu1 %v1410_v43  ;;  %v791_v4 = vmul.f32 %v644_v56, %v1968_v50  ;;  %v798_v5 = vsub.f32 %v790_v58, %v326_v32  ;;  %s1340_s16 = sshll.u32 %s1707_s4, 4  ;;  %s1341_s16 = int_to_ptr.vmem [resolvable:$true] %s1340_s16 }
 0x11a   :  { %v797_v3 = vsub.f32 %v789_v54, %v1921_v19  ;;  %v939_v6 = vmul.f32 %v792_v57, %v1872_v45  ;;  %s1682_s17 = scalar_lea.vmem %s1341_s16, 512  ;;  %p1687_p1 = scmp.lt.s32.totalorder %s1341_s16, %s1341_s16 }
 0x11b   :  { %1558 = vmatmul.mubr.msk.f32.gmra.mrb[2].mxu1 %vm330_vm0, %v640_v11  ;;  %v799_v8 = vsub.f32 %v791_v4, %v327_v38  ;;  %v948_v11 = vsub.f32 %v940_v7, %v638_v40  ;;  %v945_v16 = vmul.f32 %v798_v5, %v1962_v44  ;;  %p1683_p0 = scmp.ne.s32.totalorder %s1341_s16, %s1682_s17  ;;  %p1688_p2 = scmp.lt.s32.totalorder %s1682_s17, %s1682_s17 }
 0x11c   :  { %1560 = vmatprep.mubr.msk.f32.mxu1 %vm330_vm0, %v641_v48  ;;  %v947_v9 = vsub.f32 %v939_v6, %v637_v34  ;;  %v944_v14 = vmul.f32 %v797_v3, %v1926_v20 }
 0x11d   :  { %v946_v19 = vmul.f32 %v799_v8, %v1968_v50  ;;  %v953_v22 = vsub.f32 %v945_v16, %v643_v52  ;;  %v1095_v24 = vmul.f32 %v948_v11, %v1874_v47  ;;  %p1689_p3 = por %p1688_p2, %p1687_p1 }
 0x11e   :  { %v952_v18 = vsub.f32 %v944_v14, %v642_v2  ;;  %v1094_v23 = vmul.f32 %v947_v9, %v1872_v45 }
 0x11f   :  { %1561 = vmatmul.mubr.msk.f32.gmra.mrb[4].mxu1 %vm330_vm0, %v642_v2  ;;  %v954_v25 = vsub.f32 %v946_v19, %v644_v56  ;;  %v1103_v28 = vsub.f32 %v1095_v24, %v793_v61  ;;  %v1100_v47 = vmul.f32 %v953_v22, %v1962_v44  ;;  %p1690_p4 = pnand %p1689_p3, %p1683_p0 }
 0x120   :  { %1563 = vmatprep.mubr.msk.f32.mxu1 %vm330_vm0, %v643_v52  ;;  %v1102_v26 = vsub.f32 %v1094_v23, %v792_v57  ;;  %v1099_v45 = vmul.f32 %v952_v18, %v1926_v20 }
 0x121   :  { %v1101_v32 = vmul.f32 %v954_v25, %v1968_v50 }
 0x122   :  { %v1107_v60 = vsub.f32 %v1099_v45, %v797_v3 }
 0x123   :  { %1564 = vmatmul.mubr.msk.f32.gmra.mrb[6].mxu1 %vm330_vm0, %v644_v56  ;;  %v1109_v33 = vsub.f32 %v1101_v32, %v799_v8 }
 0x124   :  { %1568 = vmatprep.mubr.msk.f32.mxu1 %vm330_vm0, %v792_v57 }
 0x127   :  { %1569 = vmatmul.mubr.msk.f32.vlgmr.msra.gmra.mrb[0].mxu1 %vm330_vm0, %v793_v61 }
 0x128   :  { %1581 = vmatpush3.msra.mxu1 %v1410_v43  ;;  %1571 = vmatprep.mubr.msk.f32.mxu1 %vm330_vm0, %v794_v62 }
 0x129   :  { %1594 = vmatprep.subr.mxu1 %v1419_v0 }
 0x12b   :  { %1572 = vmatmul.mubr.msk.f32.gmra.mrb[2].mxu1 %vm330_vm0, %v1928_v21 }
 0x12c   :  { %1574 = vmatprep.mubr.msk.f32.mxu1 %vm330_vm0, %v796_v1 }
 0x12f   :  { %1575 = vmatmul.mubr.msk.f32.gmra.mrb[4].mxu1 %vm330_vm0, %v797_v3 }
 0x130   :  { %1577 = vmatprep.mubr.msk.f32.mxu1 %vm330_vm0, %v798_v5 }
 0x133   :  { %1578 = vmatmul.mubr.msk.f32.gmra.mrb[6].mxu1 %vm330_vm0, %v799_v8 }
 0x134   :  { %1582 = vmatprep.mubr.msk.f32.mxu1 %vm330_vm0, %v947_v9 }
 0x137   :  { %1583 = vmatmul.mubr.msk.f32.vlgmr.msra.gmra.mrb[0].mxu1 %vm330_vm0, %v948_v11 }
 0x138   :  { %1595 = vmatpush3.msra.mxu1 %v1419_v0  ;;  %1585 = vmatprep.mubr.msk.f32.mxu1 %vm330_vm0, %v949_v12 }
 0x13b   :  { %1586 = vmatmul.mubr.msk.f32.gmra.mrb[2].mxu1 %vm330_vm0, %v1935_v30  ;;  %v1098_v30 = vmul.f32 %v951_v15, %v1918_v17  ;;  %v1108_v17 = vsub.f32 %v1100_v47, %v798_v5 }
 0x13c   :  { %1588 = vmatprep.mubr.msk.f32.mxu1 %vm330_vm0, %v951_v15 }
 0x13d   :  { %v1106_v31 = vsub.f32 %v1098_v30, %v796_v1 }
 0x13f   :  { %1589 = vmatmul.mubr.msk.f32.gmra.mrb[4].mxu1 %vm330_vm0, %v952_v18 }
 0x140   :  { %1591 = vmatprep.mubr.msk.f32.mxu1 %vm330_vm0, %v953_v22 }
 0x143   :  { %1592 = vmatmul.mubr.msk.f32.gmra.mrb[6].mxu1 %vm330_vm0, %v954_v25 }
 0x144   :  { %1596 = vmatprep.mubr.msk.f32.mxu1 %vm330_vm0, %v1102_v26 }
 0x147   :  { %1597 = vmatmul.mubr.msk.f32.vlgmr.msra.gmra.mrb[0].mxu1 %vm330_vm0, %v1103_v28 }
 0x148   :  { %1599 = vmatprep.mubr.msk.f32.mxu1 %vm330_vm0, %v1104_v29 }
 0x14b   :  { %1600 = vmatmul.mubr.msk.f32.gmra.mrb[2].mxu1 %vm330_vm0, %v1105_v39 }
 0x14c   :  { %1602 = vmatprep.mubr.msk.f32.mxu1 %vm330_vm0, %v1106_v31 }
 0x14f   :  { %1603 = vmatmul.mubr.msk.f32.gmra.mrb[4].mxu1 %vm330_vm0, %v1107_v60 }
 0x150   :  { %1605 = vmatprep.mubr.msk.f32.mxu1 %vm330_vm0, %v1108_v17 }
 0x153   :  { %1606 = vmatmul.mubr.msk.f32.gmra.mrb[6].mxu1 %vm330_vm0, %v1109_v33 }
 0x1d0   :  { %v1528_v20 = vpop.f32.mrb[16].mxu0 }
 0x1d1   :  { %v421_v34 = vpop.f32.mrb[17].mxu0 }
 0x1d8   :  { %v1531_v35 = vpop.f32.mrb[18].mxu0 }
 0x1d9   :  { %v431_v36 = vpop.f32.mrb[19].mxu0 }
 0x1e0   :  { %v1534_v21 = vpop.f32.mrb[20].mxu0 }
 0x1e1   :  { %v441_v37 = vpop.f32.mrb[21].mxu0 }
 0x1e8   :  { %v1537_v38 = vpop.f32.mrb[22].mxu0 }
 0x1e9   :  { %v451_v39 = vpop.f32.mrb[23].mxu0 }
 0x21a   :  { %v1598_v40 = vpop.f32.mrb[0].mxu1 }
 0x21b   :  { %v1608_v42 = vadd.f32 %v1598_v40, %v1528_v20  ;;  %v1202_v43 = vpop.f32.mrb[1].mxu1 }
 0x21c   :  { %v1609_v44 = vadd.f32 %v1202_v43, %v421_v34 }
 0x21d   :  { %v1257_v46 = vadd.f32 %v1608_v42, %v1428_v41 }
 0x21e   :  { %v1256_v48 = vadd.f32 %v1609_v44, %v1428_v41  ;;  %v1601_v49 = vpop.f32.mrb[2].mxu1 }
 0x21f   :  { %v1610_v50 = vadd.f32 %v1601_v49, %v1531_v35  ;;  %v1212_v2 = vpop.f32.mrb[3].mxu1 }
 0x220   :  { %v1611_v51 = vadd.f32 %v1212_v2, %v431_v36  ;;  %v1264_v52 = vpack.c.bf16 %v1257_v46, %v1256_v48 }
 0x221   :  { %v1259_v53 = vadd.f32 %v1610_v50, %v1428_v41 }
 0x222   :  { %v1258_v55 = vadd.f32 %v1611_v51, %v1428_v41  ;;  %v1604_v56 = vpop.f32.mrb[4].mxu1  ;;  %1268 = vxpose.xlu0.c.b16.start [1/4] (short) (narrow) %v1264_v52, 16 }
 0x223   :  { %v1612_v57 = vadd.f32 %v1604_v56, %v1534_v21  ;;  %v1222_v59 = vpop.f32.mrb[5].mxu1 }
 0x224   :  { %v1265_v61 = vpack.c.bf16 %v1259_v53, %v1258_v55  ;;  %v1613_v62 = vadd.f32 %v1222_v59, %v441_v37 }
 0x225   :  { %v1261_v63 = vadd.f32 %v1612_v57, %v1428_v41 }
 0x226   :  { %v1260_v0 = vadd.f32 %v1613_v62, %v1428_v41  ;;  %v1607_v54 = vpop.f32.mrb[6].mxu1  ;;  %1269 = vxpose.xlu0.c.b16.cont [2/4] (short) (narrow) %v1265_v61, 16 }
 0x227   :  { %v1614_v1 = vadd.f32 %v1607_v54, %v1537_v38  ;;  %v1232_v58 = vpop.f32.mrb[7].mxu1 }
 0x228   :  { %v1266_v3 = vpack.c.bf16 %v1261_v63, %v1260_v0  ;;  %v1615_v4 = vadd.f32 %v1232_v58, %v451_v39 }
 0x229   :  { %v1263_v5 = vadd.f32 %v1614_v1, %v1428_v41 }
 0x22a   :  { %v1262_v6 = vadd.f32 %v1615_v4, %v1428_v41  ;;  %1270 = vxpose.xlu0.c.b16.cont [3/4] (short) (narrow) %v1266_v3, 16 }
 0x22c   :  { %v1267_v7 = vpack.c.bf16 %v1263_v5, %v1262_v6 }
 0x22e   :  { %1271 = vxpose.xlu0.c.b16.end [4/4] (short) (narrow) %v1267_v7, 16 }
 0x288   :  { %v1276_v8 = vpop.trf.xlu0 }
 0x289   :  { %1429 = vmatmul.mubr.msk.bf16.vlgmr.msra.gmra.mrb[24].mxu0 %vm1284_vm1, %v1276_v8 }
 0x35c   :  { %v1322_v9 = vpop.f32.mrb[24].mxu0 }
 0x35d   :  { %1331 = vst [vmem:[#allocation2] sm:$0xff] %v1322_v9  ;;  %v1324_v10 = vpop.f32.mrb[25].mxu0 }
 0x35e   :  { %1332 = vst [vmem:[#allocation2 + $0x8] sm:$0xff] %v1324_v10  ;;  %v1326_v11 = vpop.f32.mrb[26].mxu0 }
 0x35f   :  { %1333 = vst [vmem:[#allocation2 + $0x10] sm:$0xff] %v1326_v11  ;;  %v1328_v12 = vpop.f32.mrb[27].mxu0 }
 0x360   :  { %1334 = vst [vmem:[#allocation2 + $0x18] sm:$0xff] %v1328_v12 }
 0x361   :  { %1693 = shalt.err (!%p1690_p4)
}
 0x362   :  { %s1694_s20 = scalar_lea.hbm %s2053_s5, 512 }
 0x363   :  { %p1695_p5 = scmp.ne.s32.totalorder %s2053_s5, %s1694_s20  ;;  %p1698_p6 = scmp.lt.u32.totalorder %s1694_s20, %s2053_s5 }
 0x365   :  { %p1700_p7 = pnand %p1698_p6, %p1695_p5 }
 0x367   :  { %1703 = shalt.err (!%p1700_p7)
}
 0x368   :  { %s1708_s25 = smov 256   ;;  %s1709_s26 = smov 16  }
 0x369   :  { %1346 = dma.vmem_to_hbm [thread:$0]  %s1341_s16, 512, %s2053_s5, [#allocation3], %s1708_s25, %s1708_s25, %s1709_s26  }
 0x36a   :  { %1704 = dma.done.wait [#allocation3], 512  }
 0x36b   :  { %1705 = vsyncadd [#allocation3], 4294966784 }
 0x36c   :  { %1350 = vsyncpa [#allocation3], 1 }

</bundles_post_ra>
